<compile_context>
chip_gen: v6e
topology: v6e:2x2x1
jax: 0.10.0
libtpu: 0.0.40
codegen_flags: <defaults>
</compile_context>

<pallas_src>
import jax
import jax.numpy as jnp
from jax import lax
from jax.experimental import pallas as pl
from jax.experimental.pallas import tpu as pltpu

# ---- model hyper-parameters (small, consistent with the module's conf_dict) ----
B = 2          # batch_size
S = 8          # seq_length
E = 16         # emb_dim
K = 3          # filter_size
P = (K - 1) // 2
F = 4          # num_filters
H = 32         # hidden_dim
EPS = 1e-5     # torch BatchNorm2d default eps

assert S % F == 0, "torch .view row packing below assumes S divisible by F"


# -------------------- fused Pallas kernel --------------------

def cnn_fused_kernel(x_ref, wtap_ref, shift_ref, fcw_ref, fcb_ref, out_ref):
    """Fused conv(1->F) + folded-BN + ReLU + torch-view + Linear + ReLU.

    x_ref    : (B, S, E)   f32 VMEM   unpadded input (halo handled in-kernel)
    wtap_ref : (F*K*K,)    f32 SMEM   conv taps pre-scaled by BN gamma/sqrt(var+eps)
    shift_ref: (F,)        f32 SMEM   folded conv-bias + BN shift, per filter
    fcw_ref  : (H, F*E)    f32 VMEM   torch Linear weight (out, in), NOT transposed
    fcb_ref  : (1, H)      f32 VMEM
    out_ref  : (B, S, H)   f32 VMEM
    """
    x = x_ref[...]                                            # (B, S, E)

    # ---- 9 shifted windows with implicit zero padding (built ONCE, shared by all filters)
    def shift_rows(v, oh):
        if oh == 0:
            return v
        z = jnp.zeros((B, abs(oh), E), jnp.float32)
        if oh > 0:
            return jnp.concatenate([v[:, oh:, :], z], axis=1)
        return jnp.concatenate([z, v[:, :oh, :]], axis=1)

    def shift_cols(v, ow):
        if ow == 0:
            return v
        z = jnp.zeros((B, S, abs(ow)), jnp.float32)
        if ow > 0:
            return jnp.concatenate([v[:, :, ow:], z], axis=2)
        return jnp.concatenate([z, v[:, :, :ow]], axis=2)

    row_shifted = [shift_rows(x, dh - P) for dh in range(K)]
    # patches[dh*K + dw][b, s, e] = x_padded[b, s + dh, e + dw]
    patches = [shift_cols(row_shifted[dh], dw - P)
               for dh in range(K) for dw in range(K)]

    # ---- conv taps (BN scale already folded in) + shift + ReLU, per filter ----
    acts = []
    for f in range(F):
        taps = [wtap_ref[f * K * K + k] for k in range(K * K)]   # scalars from SMEM
        acc = patches[0] * taps[0]
        for k in range(1, K * K):
            acc = acc + patches[k] * taps[k]
        acts.append(jnp.maximum(acc + shift_ref[f], 0.0))        # (B, S, E)

    # ---- torch .view(B, -1, F*E) of the NCHW conv output:
    # row m = f*(S//F) + t holds seq positions t*F .. t*F+F-1 of filter f,
    # laid out as F consecutive E-wide lane blocks (lane-dense, width F*E).
    rows = []
    for f in range(F):
        act = acts[f]
        for t in range(S // F):
            pieces = [act[:, t * F + j: t * F + j + 1, :] for j in range(F)]  # (B,1,E)
            rows.append(jnp.concatenate(pieces, axis=-1))                     # (B,1,F*E)
    x2d = jnp.concatenate(rows, axis=1)                                       # (B,S,F*E)

    # ---- Linear + ReLU on the MXU, contracting against the untransposed torch weight
    bias = fcb_ref[...]                                        # (1, H)
    for b in range(B):                                         # B is tiny & static
        y = lax.dot_general(x2d[b], fcw_ref[...],
                            dimension_numbers=(((1,), (1,)), ((), ())),
                            preferred_element_type=jnp.float32)               # (S, H)
        out_ref[b, :, :] = jnp.maximum(y + bias, 0.0)


# -------------------- wrapper --------------------

@jax.jit
def cnn_forward(x, conv_w, conv_b, gamma, beta, run_mean, run_var, fc_w, fc_b):
    """Pallas implementation of CNN.forward.  x: (B, S, E) -> (B, S, H)."""
    # Fold eval-mode BatchNorm into the conv: scale into the taps, shift per filter.
    a = gamma / jnp.sqrt(run_var + EPS)                                  # (F,)
    w_eff = (conv_w.reshape(F, K * K) * a[:, None]).reshape(F * K * K)   # (F*K*K,)
    shift = (conv_b - run_mean) * a + beta                               # (F,)

    return pl.pallas_call(
        cnn_fused_kernel,
        out_shape=jax.ShapeDtypeStruct((B, S, H), jnp.float32),
        in_specs=[
            pl.BlockSpec(memory_space=pltpu.MemorySpace.VMEM),   # x
            pl.BlockSpec(memory_space=pltpu.MemorySpace.SMEM),   # conv taps (flat 1-D)
            pl.BlockSpec(memory_space=pltpu.MemorySpace.SMEM),   # per-filter shift
            pl.BlockSpec(memory_space=pltpu.MemorySpace.VMEM),   # fc_w (H, F*E)
            pl.BlockSpec(memory_space=pltpu.MemorySpace.VMEM),   # fc_b (1, H)
        ],
        out_specs=pl.BlockSpec(memory_space=pltpu.MemorySpace.VMEM),
    )(x, w_eff, shift, fc_w, fc_b.reshape(1, H))


def reference_forward(x, conv_w, conv_b, gamma, beta, run_mean, run_var, fc_w, fc_b):
    """Pure-JAX reference reproducing the PyTorch forward (eval-mode BN)."""
    xn = x[:, None, :, :]                                       # (B, 1, S, E)  NCHW
    y = lax.conv_general_dilated(
        xn, conv_w, window_strides=(1, 1),
        padding=[(P, P), (P, P)],
        dimension_numbers=("NCHW", "OIHW", "NCHW"))
    y = y + conv_b[None, :, None, None]
    y = (y - run_mean[None, :, None, None]) / jnp.sqrt(run_var[None, :, None, None] + EPS)
    y = y * gamma[None, :, None, None] + beta[None, :, None, None]
    y = jnp.maximum(y, 0.0)
    y = y.reshape(B, -1, F * E)                                 # torch .view order
    y = jnp.maximum(jnp.einsum("bsk,hk->bsh", y, fc_w) + fc_b, 0.0)
    return y


if __name__ == "__main__":
    key = jax.random.PRNGKey(0)
    (kx, kw, kb, kg, kbeta, kmean, kvar, kfw, kfb) = jax.random.split(key, 9)

    x = jax.random.normal(kx, (B, S, E), dtype=jnp.float32)

    # Deterministic synthetic parameters (shapes follow nn.Conv2d / BatchNorm2d / Linear).
    conv_w = 0.2 * jax.random.normal(kw, (F, 1, K, K), dtype=jnp.float32)     # OIHW
    conv_b = 0.1 * jax.random.normal(kb, (F,), dtype=jnp.float32)
    gamma = 1.0 + 0.1 * jax.random.normal(kg, (F,), dtype=jnp.float32)
    beta = 0.1 * jax.random.normal(kbeta, (F,), dtype=jnp.float32)
    run_mean = 0.1 * jax.random.normal(kmean, (F,), dtype=jnp.float32)
    run_var = jax.random.uniform(kvar, (F,), dtype=jnp.float32,
                                 minval=0.5, maxval=1.5)
    fc_w = 0.1 * jax.random.normal(kfw, (H, F * E), dtype=jnp.float32)        # (out, in)
    fc_b = 0.1 * jax.random.normal(kfb, (H,), dtype=jnp.float32)

    out = jax.block_until_ready(
        cnn_forward(x, conv_w, conv_b, gamma, beta, run_mean, run_var, fc_w, fc_b))
    ref = reference_forward(x, conv_w, conv_b, gamma, beta, run_mean, run_var,
                            fc_w, fc_b)

    assert out.shape == (B, S, H)
    assert jnp.allclose(out, ref, atol=1e-4, rtol=1e-4)

    print("KERNEL_OK")
</pallas_src>

<mosaic_0001>
module attributes {stable_mosaic.version = 11 : i64} {
  func.func @cnn_fused_kernel(%arg0: memref<2x8x16xf32, #tpu.memory_space<vmem>>, %arg1: memref<36xf32, #tpu.memory_space<smem>>, %arg2: memref<4xf32, #tpu.memory_space<smem>>, %arg3: memref<32x64xf32, #tpu.memory_space<vmem>>, %arg4: memref<1x32xf32, #tpu.memory_space<vmem>>, %arg5: memref<2x8x32xf32, #tpu.memory_space<vmem>>) attributes {dimension_semantics = [], scalar_prefetch = 0 : i64, scratch_operands = 0 : i64, tpu.core_type = #tpu.core_type<tc>} {
    %c0 = arith.constant 0 : index
    %c0_0 = arith.constant 0 : index
    %c0_1 = arith.constant 0 : index
    %0 = vector.load %arg0[%c0, %c0_0, %c0_1] : memref<2x8x16xf32, #tpu.memory_space<vmem>>, vector<2x8x16xf32>
    %cst = arith.constant 0.000000e+00 : f32
    %1 = vector.broadcast %cst : f32 to vector<2x1x16xf32>
    %2 = vector.extract_strided_slice %0 {offsets = [0, 0, 0], sizes = [2, 7, 16], strides = [1, 1, 1]} : vector<2x8x16xf32> to vector<2x7x16xf32>
    %3 = tpu.concatenate %1, %2 in 1 : vector<2x1x16xf32>, vector<2x7x16xf32> -> vector<2x8x16xf32>
    %cst_2 = arith.constant 0.000000e+00 : f32
    %4 = vector.broadcast %cst_2 : f32 to vector<2x1x16xf32>
    %5 = vector.extract_strided_slice %0 {offsets = [0, 1, 0], sizes = [2, 7, 16], strides = [1, 1, 1]} : vector<2x8x16xf32> to vector<2x7x16xf32>
    %6 = tpu.concatenate %5, %4 in 1 : vector<2x7x16xf32>, vector<2x1x16xf32> -> vector<2x8x16xf32>
    %cst_3 = arith.constant 0.000000e+00 : f32
    %7 = vector.broadcast %cst_3 : f32 to vector<2x8x1xf32>
    %8 = vector.extract_strided_slice %3 {offsets = [0, 0, 0], sizes = [2, 8, 15], strides = [1, 1, 1]} : vector<2x8x16xf32> to vector<2x8x15xf32>
    %9 = tpu.concatenate %7, %8 in 2 : vector<2x8x1xf32>, vector<2x8x15xf32> -> vector<2x8x16xf32>
    %cst_4 = arith.constant 0.000000e+00 : f32
    %10 = vector.broadcast %cst_4 : f32 to vector<2x8x1xf32>
    %11 = vector.extract_strided_slice %3 {offsets = [0, 0, 1], sizes = [2, 8, 15], strides = [1, 1, 1]} : vector<2x8x16xf32> to vector<2x8x15xf32>
    %12 = tpu.concatenate %11, %10 in 2 : vector<2x8x15xf32>, vector<2x8x1xf32> -> vector<2x8x16xf32>
    %cst_5 = arith.constant 0.000000e+00 : f32
    %13 = vector.broadcast %cst_5 : f32 to vector<2x8x1xf32>
    %14 = vector.extract_strided_slice %0 {offsets = [0, 0, 0], sizes = [2, 8, 15], strides = [1, 1, 1]} : vector<2x8x16xf32> to vector<2x8x15xf32>
    %15 = tpu.concatenate %13, %14 in 2 : vector<2x8x1xf32>, vector<2x8x15xf32> -> vector<2x8x16xf32>
    %cst_6 = arith.constant 0.000000e+00 : f32
    %16 = vector.broadcast %cst_6 : f32 to vector<2x8x1xf32>
    %17 = vector.extract_strided_slice %0 {offsets = [0, 0, 1], sizes = [2, 8, 15], strides = [1, 1, 1]} : vector<2x8x16xf32> to vector<2x8x15xf32>
    %18 = tpu.concatenate %17, %16 in 2 : vector<2x8x15xf32>, vector<2x8x1xf32> -> vector<2x8x16xf32>
    %cst_7 = arith.constant 0.000000e+00 : f32
    %19 = vector.broadcast %cst_7 : f32 to vector<2x8x1xf32>
    %20 = vector.extract_strided_slice %6 {offsets = [0, 0, 0], sizes = [2, 8, 15], strides = [1, 1, 1]} : vector<2x8x16xf32> to vector<2x8x15xf32>
    %21 = tpu.concatenate %19, %20 in 2 : vector<2x8x1xf32>, vector<2x8x15xf32> -> vector<2x8x16xf32>
    %cst_8 = arith.constant 0.000000e+00 : f32
    %22 = vector.broadcast %cst_8 : f32 to vector<2x8x1xf32>
    %23 = vector.extract_strided_slice %6 {offsets = [0, 0, 1], sizes = [2, 8, 15], strides = [1, 1, 1]} : vector<2x8x16xf32> to vector<2x8x15xf32>
    %24 = tpu.concatenate %23, %22 in 2 : vector<2x8x15xf32>, vector<2x8x1xf32> -> vector<2x8x16xf32>
    %c0_9 = arith.constant 0 : index
    %25 = memref.load %arg1[%c0_9] : memref<36xf32, #tpu.memory_space<smem>>
    %c1 = arith.constant 1 : index
    %26 = memref.load %arg1[%c1] : memref<36xf32, #tpu.memory_space<smem>>
    %c2 = arith.constant 2 : index
    %27 = memref.load %arg1[%c2] : memref<36xf32, #tpu.memory_space<smem>>
    %c3 = arith.constant 3 : index
    %28 = memref.load %arg1[%c3] : memref<36xf32, #tpu.memory_space<smem>>
    %c4 = arith.constant 4 : index
    %29 = memref.load %arg1[%c4] : memref<36xf32, #tpu.memory_space<smem>>
    %c5 = arith.constant 5 : index
    %30 = memref.load %arg1[%c5] : memref<36xf32, #tpu.memory_space<smem>>
    %c6 = arith.constant 6 : index
    %31 = memref.load %arg1[%c6] : memref<36xf32, #tpu.memory_space<smem>>
    %c7 = arith.constant 7 : index
    %32 = memref.load %arg1[%c7] : memref<36xf32, #tpu.memory_space<smem>>
    %c8 = arith.constant 8 : index
    %33 = memref.load %arg1[%c8] : memref<36xf32, #tpu.memory_space<smem>>
    %34 = vector.broadcast %25 : f32 to vector<2x8x16xf32>
    %35 = arith.mulf %9, %34 : vector<2x8x16xf32>
    %36 = vector.broadcast %26 : f32 to vector<2x8x16xf32>
    %37 = arith.mulf %3, %36 : vector<2x8x16xf32>
    %38 = arith.addf %35, %37 : vector<2x8x16xf32>
    %39 = vector.broadcast %27 : f32 to vector<2x8x16xf32>
    %40 = arith.mulf %12, %39 : vector<2x8x16xf32>
    %41 = arith.addf %38, %40 : vector<2x8x16xf32>
    %42 = vector.broadcast %28 : f32 to vector<2x8x16xf32>
    %43 = arith.mulf %15, %42 : vector<2x8x16xf32>
    %44 = arith.addf %41, %43 : vector<2x8x16xf32>
    %45 = vector.broadcast %29 : f32 to vector<2x8x16xf32>
    %46 = arith.mulf %0, %45 : vector<2x8x16xf32>
    %47 = arith.addf %44, %46 : vector<2x8x16xf32>
    %48 = vector.broadcast %30 : f32 to vector<2x8x16xf32>
    %49 = arith.mulf %18, %48 : vector<2x8x16xf32>
    %50 = arith.addf %47, %49 : vector<2x8x16xf32>
    %51 = vector.broadcast %31 : f32 to vector<2x8x16xf32>
    %52 = arith.mulf %21, %51 : vector<2x8x16xf32>
    %53 = arith.addf %50, %52 : vector<2x8x16xf32>
    %54 = vector.broadcast %32 : f32 to vector<2x8x16xf32>
    %55 = arith.mulf %6, %54 : vector<2x8x16xf32>
    %56 = arith.addf %53, %55 : vector<2x8x16xf32>
    %57 = vector.broadcast %33 : f32 to vector<2x8x16xf32>
    %58 = arith.mulf %24, %57 : vector<2x8x16xf32>
    %59 = arith.addf %56, %58 : vector<2x8x16xf32>
    %c0_10 = arith.constant 0 : index
    %60 = memref.load %arg2[%c0_10] : memref<4xf32, #tpu.memory_space<smem>>
    %61 = vector.broadcast %60 : f32 to vector<2x8x16xf32>
    %62 = arith.addf %59, %61 : vector<2x8x16xf32>
    %cst_11 = arith.constant 0.000000e+00 : f32
    %63 = vector.broadcast %cst_11 : f32 to vector<2x8x16xf32>
    %64 = arith.maximumf %62, %63 : vector<2x8x16xf32>
    %c9 = arith.constant 9 : index
    %65 = memref.load %arg1[%c9] : memref<36xf32, #tpu.memory_space<smem>>
    %c10 = arith.constant 10 : index
    %66 = memref.load %arg1[%c10] : memref<36xf32, #tpu.memory_space<smem>>
    %c11 = arith.constant 11 : index
    %67 = memref.load %arg1[%c11] : memref<36xf32, #tpu.memory_space<smem>>
    %c12 = arith.constant 12 : index
    %68 = memref.load %arg1[%c12] : memref<36xf32, #tpu.memory_space<smem>>
    %c13 = arith.constant 13 : index
    %69 = memref.load %arg1[%c13] : memref<36xf32, #tpu.memory_space<smem>>
    %c14 = arith.constant 14 : index
    %70 = memref.load %arg1[%c14] : memref<36xf32, #tpu.memory_space<smem>>
    %c15 = arith.constant 15 : index
    %71 = memref.load %arg1[%c15] : memref<36xf32, #tpu.memory_space<smem>>
    %c16 = arith.constant 16 : index
    %72 = memref.load %arg1[%c16] : memref<36xf32, #tpu.memory_space<smem>>
    %c17 = arith.constant 17 : index
    %73 = memref.load %arg1[%c17] : memref<36xf32, #tpu.memory_space<smem>>
    %74 = vector.broadcast %65 : f32 to vector<2x8x16xf32>
    %75 = arith.mulf %9, %74 : vector<2x8x16xf32>
    %76 = vector.broadcast %66 : f32 to vector<2x8x16xf32>
    %77 = arith.mulf %3, %76 : vector<2x8x16xf32>
    %78 = arith.addf %75, %77 : vector<2x8x16xf32>
    %79 = vector.broadcast %67 : f32 to vector<2x8x16xf32>
    %80 = arith.mulf %12, %79 : vector<2x8x16xf32>
    %81 = arith.addf %78, %80 : vector<2x8x16xf32>
    %82 = vector.broadcast %68 : f32 to vector<2x8x16xf32>
    %83 = arith.mulf %15, %82 : vector<2x8x16xf32>
    %84 = arith.addf %81, %83 : vector<2x8x16xf32>
    %85 = vector.broadcast %69 : f32 to vector<2x8x16xf32>
    %86 = arith.mulf %0, %85 : vector<2x8x16xf32>
    %87 = arith.addf %84, %86 : vector<2x8x16xf32>
    %88 = vector.broadcast %70 : f32 to vector<2x8x16xf32>
    %89 = arith.mulf %18, %88 : vector<2x8x16xf32>
    %90 = arith.addf %87, %89 : vector<2x8x16xf32>
    %91 = vector.broadcast %71 : f32 to vector<2x8x16xf32>
    %92 = arith.mulf %21, %91 : vector<2x8x16xf32>
    %93 = arith.addf %90, %92 : vector<2x8x16xf32>
    %94 = vector.broadcast %72 : f32 to vector<2x8x16xf32>
    %95 = arith.mulf %6, %94 : vector<2x8x16xf32>
    %96 = arith.addf %93, %95 : vector<2x8x16xf32>
    %97 = vector.broadcast %73 : f32 to vector<2x8x16xf32>
    %98 = arith.mulf %24, %97 : vector<2x8x16xf32>
    %99 = arith.addf %96, %98 : vector<2x8x16xf32>
    %c1_12 = arith.constant 1 : index
    %100 = memref.load %arg2[%c1_12] : memref<4xf32, #tpu.memory_space<smem>>
    %101 = vector.broadcast %100 : f32 to vector<2x8x16xf32>
    %102 = arith.addf %99, %101 : vector<2x8x16xf32>
    %cst_13 = arith.constant 0.000000e+00 : f32
    %103 = vector.broadcast %cst_13 : f32 to vector<2x8x16xf32>
    %104 = arith.maximumf %102, %103 : vector<2x8x16xf32>
    %c18 = arith.constant 18 : index
    %105 = memref.load %arg1[%c18] : memref<36xf32, #tpu.memory_space<smem>>
    %c19 = arith.constant 19 : index
    %106 = memref.load %arg1[%c19] : memref<36xf32, #tpu.memory_space<smem>>
    %c20 = arith.constant 20 : index
    %107 = memref.load %arg1[%c20] : memref<36xf32, #tpu.memory_space<smem>>
    %c21 = arith.constant 21 : index
    %108 = memref.load %arg1[%c21] : memref<36xf32, #tpu.memory_space<smem>>
    %c22 = arith.constant 22 : index
    %109 = memref.load %arg1[%c22] : memref<36xf32, #tpu.memory_space<smem>>
    %c23 = arith.constant 23 : index
    %110 = memref.load %arg1[%c23] : memref<36xf32, #tpu.memory_space<smem>>
    %c24 = arith.constant 24 : index
    %111 = memref.load %arg1[%c24] : memref<36xf32, #tpu.memory_space<smem>>
    %c25 = arith.constant 25 : index
    %112 = memref.load %arg1[%c25] : memref<36xf32, #tpu.memory_space<smem>>
    %c26 = arith.constant 26 : index
    %113 = memref.load %arg1[%c26] : memref<36xf32, #tpu.memory_space<smem>>
    %114 = vector.broadcast %105 : f32 to vector<2x8x16xf32>
    %115 = arith.mulf %9, %114 : vector<2x8x16xf32>
    %116 = vector.broadcast %106 : f32 to vector<2x8x16xf32>
    %117 = arith.mulf %3, %116 : vector<2x8x16xf32>
    %118 = arith.addf %115, %117 : vector<2x8x16xf32>
    %119 = vector.broadcast %107 : f32 to vector<2x8x16xf32>
    %120 = arith.mulf %12, %119 : vector<2x8x16xf32>
    %121 = arith.addf %118, %120 : vector<2x8x16xf32>
    %122 = vector.broadcast %108 : f32 to vector<2x8x16xf32>
    %123 = arith.mulf %15, %122 : vector<2x8x16xf32>
    %124 = arith.addf %121, %123 : vector<2x8x16xf32>
    %125 = vector.broadcast %109 : f32 to vector<2x8x16xf32>
    %126 = arith.mulf %0, %125 : vector<2x8x16xf32>
    %127 = arith.addf %124, %126 : vector<2x8x16xf32>
    %128 = vector.broadcast %110 : f32 to vector<2x8x16xf32>
    %129 = arith.mulf %18, %128 : vector<2x8x16xf32>
    %130 = arith.addf %127, %129 : vector<2x8x16xf32>
    %131 = vector.broadcast %111 : f32 to vector<2x8x16xf32>
    %132 = arith.mulf %21, %131 : vector<2x8x16xf32>
    %133 = arith.addf %130, %132 : vector<2x8x16xf32>
    %134 = vector.broadcast %112 : f32 to vector<2x8x16xf32>
    %135 = arith.mulf %6, %134 : vector<2x8x16xf32>
    %136 = arith.addf %133, %135 : vector<2x8x16xf32>
    %137 = vector.broadcast %113 : f32 to vector<2x8x16xf32>
    %138 = arith.mulf %24, %137 : vector<2x8x16xf32>
    %139 = arith.addf %136, %138 : vector<2x8x16xf32>
    %c2_14 = arith.constant 2 : index
    %140 = memref.load %arg2[%c2_14] : memref<4xf32, #tpu.memory_space<smem>>
    %141 = vector.broadcast %140 : f32 to vector<2x8x16xf32>
    %142 = arith.addf %139, %141 : vector<2x8x16xf32>
    %cst_15 = arith.constant 0.000000e+00 : f32
    %143 = vector.broadcast %cst_15 : f32 to vector<2x8x16xf32>
    %144 = arith.maximumf %142, %143 : vector<2x8x16xf32>
    %c27 = arith.constant 27 : index
    %145 = memref.load %arg1[%c27] : memref<36xf32, #tpu.memory_space<smem>>
    %c28 = arith.constant 28 : index
    %146 = memref.load %arg1[%c28] : memref<36xf32, #tpu.memory_space<smem>>
    %c29 = arith.constant 29 : index
    %147 = memref.load %arg1[%c29] : memref<36xf32, #tpu.memory_space<smem>>
    %c30 = arith.constant 30 : index
    %148 = memref.load %arg1[%c30] : memref<36xf32, #tpu.memory_space<smem>>
    %c31 = arith.constant 31 : index
    %149 = memref.load %arg1[%c31] : memref<36xf32, #tpu.memory_space<smem>>
    %c32 = arith.constant 32 : index
    %150 = memref.load %arg1[%c32] : memref<36xf32, #tpu.memory_space<smem>>
    %c33 = arith.constant 33 : index
    %151 = memref.load %arg1[%c33] : memref<36xf32, #tpu.memory_space<smem>>
    %c34 = arith.constant 34 : index
    %152 = memref.load %arg1[%c34] : memref<36xf32, #tpu.memory_space<smem>>
    %c35 = arith.constant 35 : index
    %153 = memref.load %arg1[%c35] : memref<36xf32, #tpu.memory_space<smem>>
    %154 = vector.broadcast %145 : f32 to vector<2x8x16xf32>
    %155 = arith.mulf %9, %154 : vector<2x8x16xf32>
    %156 = vector.broadcast %146 : f32 to vector<2x8x16xf32>
    %157 = arith.mulf %3, %156 : vector<2x8x16xf32>
    %158 = arith.addf %155, %157 : vector<2x8x16xf32>
    %159 = vector.broadcast %147 : f32 to vector<2x8x16xf32>
    %160 = arith.mulf %12, %159 : vector<2x8x16xf32>
    %161 = arith.addf %158, %160 : vector<2x8x16xf32>
    %162 = vector.broadcast %148 : f32 to vector<2x8x16xf32>
    %163 = arith.mulf %15, %162 : vector<2x8x16xf32>
    %164 = arith.addf %161, %163 : vector<2x8x16xf32>
    %165 = vector.broadcast %149 : f32 to vector<2x8x16xf32>
    %166 = arith.mulf %0, %165 : vector<2x8x16xf32>
    %167 = arith.addf %164, %166 : vector<2x8x16xf32>
    %168 = vector.broadcast %150 : f32 to vector<2x8x16xf32>
    %169 = arith.mulf %18, %168 : vector<2x8x16xf32>
    %170 = arith.addf %167, %169 : vector<2x8x16xf32>
    %171 = vector.broadcast %151 : f32 to vector<2x8x16xf32>
    %172 = arith.mulf %21, %171 : vector<2x8x16xf32>
    %173 = arith.addf %170, %172 : vector<2x8x16xf32>
    %174 = vector.broadcast %152 : f32 to vector<2x8x16xf32>
    %175 = arith.mulf %6, %174 : vector<2x8x16xf32>
    %176 = arith.addf %173, %175 : vector<2x8x16xf32>
    %177 = vector.broadcast %153 : f32 to vector<2x8x16xf32>
    %178 = arith.mulf %24, %177 : vector<2x8x16xf32>
    %179 = arith.addf %176, %178 : vector<2x8x16xf32>
    %c3_16 = arith.constant 3 : index
    %180 = memref.load %arg2[%c3_16] : memref<4xf32, #tpu.memory_space<smem>>
    %181 = vector.broadcast %180 : f32 to vector<2x8x16xf32>
    %182 = arith.addf %179, %181 : vector<2x8x16xf32>
    %cst_17 = arith.constant 0.000000e+00 : f32
    %183 = vector.broadcast %cst_17 : f32 to vector<2x8x16xf32>
    %184 = arith.maximumf %182, %183 : vector<2x8x16xf32>
    %185 = vector.extract_strided_slice %64 {offsets = [0, 0, 0], sizes = [2, 1, 16], strides = [1, 1, 1]} : vector<2x8x16xf32> to vector<2x1x16xf32>
    %186 = vector.extract_strided_slice %64 {offsets = [0, 1, 0], sizes = [2, 1, 16], strides = [1, 1, 1]} : vector<2x8x16xf32> to vector<2x1x16xf32>
    %187 = vector.extract_strided_slice %64 {offsets = [0, 2, 0], sizes = [2, 1, 16], strides = [1, 1, 1]} : vector<2x8x16xf32> to vector<2x1x16xf32>
    %188 = vector.extract_strided_slice %64 {offsets = [0, 3, 0], sizes = [2, 1, 16], strides = [1, 1, 1]} : vector<2x8x16xf32> to vector<2x1x16xf32>
    %189 = tpu.concatenate %185, %186, %187, %188 in 2 : vector<2x1x16xf32>, vector<2x1x16xf32>, vector<2x1x16xf32>, vector<2x1x16xf32> -> vector<2x1x64xf32>
    %190 = vector.extract_strided_slice %64 {offsets = [0, 4, 0], sizes = [2, 1, 16], strides = [1, 1, 1]} : vector<2x8x16xf32> to vector<2x1x16xf32>
    %191 = vector.extract_strided_slice %64 {offsets = [0, 5, 0], sizes = [2, 1, 16], strides = [1, 1, 1]} : vector<2x8x16xf32> to vector<2x1x16xf32>
    %192 = vector.extract_strided_slice %64 {offsets = [0, 6, 0], sizes = [2, 1, 16], strides = [1, 1, 1]} : vector<2x8x16xf32> to vector<2x1x16xf32>
    %193 = vector.extract_strided_slice %64 {offsets = [0, 7, 0], sizes = [2, 1, 16], strides = [1, 1, 1]} : vector<2x8x16xf32> to vector<2x1x16xf32>
    %194 = tpu.concatenate %190, %191, %192, %193 in 2 : vector<2x1x16xf32>, vector<2x1x16xf32>, vector<2x1x16xf32>, vector<2x1x16xf32> -> vector<2x1x64xf32>
    %195 = vector.extract_strided_slice %104 {offsets = [0, 0, 0], sizes = [2, 1, 16], strides = [1, 1, 1]} : vector<2x8x16xf32> to vector<2x1x16xf32>
    %196 = vector.extract_strided_slice %104 {offsets = [0, 1, 0], sizes = [2, 1, 16], strides = [1, 1, 1]} : vector<2x8x16xf32> to vector<2x1x16xf32>
    %197 = vector.extract_strided_slice %104 {offsets = [0, 2, 0], sizes = [2, 1, 16], strides = [1, 1, 1]} : vector<2x8x16xf32> to vector<2x1x16xf32>
    %198 = vector.extract_strided_slice %104 {offsets = [0, 3, 0], sizes = [2, 1, 16], strides = [1, 1, 1]} : vector<2x8x16xf32> to vector<2x1x16xf32>
    %199 = tpu.concatenate %195, %196, %197, %198 in 2 : vector<2x1x16xf32>, vector<2x1x16xf32>, vector<2x1x16xf32>, vector<2x1x16xf32> -> vector<2x1x64xf32>
    %200 = vector.extract_strided_slice %104 {offsets = [0, 4, 0], sizes = [2, 1, 16], strides = [1, 1, 1]} : vector<2x8x16xf32> to vector<2x1x16xf32>
    %201 = vector.extract_strided_slice %104 {offsets = [0, 5, 0], sizes = [2, 1, 16], strides = [1, 1, 1]} : vector<2x8x16xf32> to vector<2x1x16xf32>
    %202 = vector.extract_strided_slice %104 {offsets = [0, 6, 0], sizes = [2, 1, 16], strides = [1, 1, 1]} : vector<2x8x16xf32> to vector<2x1x16xf32>
    %203 = vector.extract_strided_slice %104 {offsets = [0, 7, 0], sizes = [2, 1, 16], strides = [1, 1, 1]} : vector<2x8x16xf32> to vector<2x1x16xf32>
    %204 = tpu.concatenate %200, %201, %202, %203 in 2 : vector<2x1x16xf32>, vector<2x1x16xf32>, vector<2x1x16xf32>, vector<2x1x16xf32> -> vector<2x1x64xf32>
    %205 = vector.extract_strided_slice %144 {offsets = [0, 0, 0], sizes = [2, 1, 16], strides = [1, 1, 1]} : vector<2x8x16xf32> to vector<2x1x16xf32>
    %206 = vector.extract_strided_slice %144 {offsets = [0, 1, 0], sizes = [2, 1, 16], strides = [1, 1, 1]} : vector<2x8x16xf32> to vector<2x1x16xf32>
    %207 = vector.extract_strided_slice %144 {offsets = [0, 2, 0], sizes = [2, 1, 16], strides = [1, 1, 1]} : vector<2x8x16xf32> to vector<2x1x16xf32>
    %208 = vector.extract_strided_slice %144 {offsets = [0, 3, 0], sizes = [2, 1, 16], strides = [1, 1, 1]} : vector<2x8x16xf32> to vector<2x1x16xf32>
    %209 = tpu.concatenate %205, %206, %207, %208 in 2 : vector<2x1x16xf32>, vector<2x1x16xf32>, vector<2x1x16xf32>, vector<2x1x16xf32> -> vector<2x1x64xf32>
    %210 = vector.extract_strided_slice %144 {offsets = [0, 4, 0], sizes = [2, 1, 16], strides = [1, 1, 1]} : vector<2x8x16xf32> to vector<2x1x16xf32>
    %211 = vector.extract_strided_slice %144 {offsets = [0, 5, 0], sizes = [2, 1, 16], strides = [1, 1, 1]} : vector<2x8x16xf32> to vector<2x1x16xf32>
    %212 = vector.extract_strided_slice %144 {offsets = [0, 6, 0], sizes = [2, 1, 16], strides = [1, 1, 1]} : vector<2x8x16xf32> to vector<2x1x16xf32>
    %213 = vector.extract_strided_slice %144 {offsets = [0, 7, 0], sizes = [2, 1, 16], strides = [1, 1, 1]} : vector<2x8x16xf32> to vector<2x1x16xf32>
    %214 = tpu.concatenate %210, %211, %212, %213 in 2 : vector<2x1x16xf32>, vector<2x1x16xf32>, vector<2x1x16xf32>, vector<2x1x16xf32> -> vector<2x1x64xf32>
    %215 = vector.extract_strided_slice %184 {offsets = [0, 0, 0], sizes = [2, 1, 16], strides = [1, 1, 1]} : vector<2x8x16xf32> to vector<2x1x16xf32>
    %216 = vector.extract_strided_slice %184 {offsets = [0, 1, 0], sizes = [2, 1, 16], strides = [1, 1, 1]} : vector<2x8x16xf32> to vector<2x1x16xf32>
    %217 = vector.extract_strided_slice %184 {offsets = [0, 2, 0], sizes = [2, 1, 16], strides = [1, 1, 1]} : vector<2x8x16xf32> to vector<2x1x16xf32>
    %218 = vector.extract_strided_slice %184 {offsets = [0, 3, 0], sizes = [2, 1, 16], strides = [1, 1, 1]} : vector<2x8x16xf32> to vector<2x1x16xf32>
    %219 = tpu.concatenate %215, %216, %217, %218 in 2 : vector<2x1x16xf32>, vector<2x1x16xf32>, vector<2x1x16xf32>, vector<2x1x16xf32> -> vector<2x1x64xf32>
    %220 = vector.extract_strided_slice %184 {offsets = [0, 4, 0], sizes = [2, 1, 16], strides = [1, 1, 1]} : vector<2x8x16xf32> to vector<2x1x16xf32>
    %221 = vector.extract_strided_slice %184 {offsets = [0, 5, 0], sizes = [2, 1, 16], strides = [1, 1, 1]} : vector<2x8x16xf32> to vector<2x1x16xf32>
    %222 = vector.extract_strided_slice %184 {offsets = [0, 6, 0], sizes = [2, 1, 16], strides = [1, 1, 1]} : vector<2x8x16xf32> to vector<2x1x16xf32>
    %223 = vector.extract_strided_slice %184 {offsets = [0, 7, 0], sizes = [2, 1, 16], strides = [1, 1, 1]} : vector<2x8x16xf32> to vector<2x1x16xf32>
    %224 = tpu.concatenate %220, %221, %222, %223 in 2 : vector<2x1x16xf32>, vector<2x1x16xf32>, vector<2x1x16xf32>, vector<2x1x16xf32> -> vector<2x1x64xf32>
    %225 = tpu.concatenate %189, %194, %199, %204, %209, %214, %219, %224 in 1 : vector<2x1x64xf32>, vector<2x1x64xf32>, vector<2x1x64xf32>, vector<2x1x64xf32>, vector<2x1x64xf32>, vector<2x1x64xf32>, vector<2x1x64xf32>, vector<2x1x64xf32> -> vector<2x8x64xf32>
    %c0_18 = arith.constant 0 : index
    %c0_19 = arith.constant 0 : index
    %226 = vector.load %arg4[%c0_18, %c0_19] : memref<1x32xf32, #tpu.memory_space<vmem>>, vector<1x32xf32>
    %227 = vector.extract_strided_slice %225 {offsets = [0, 0, 0], sizes = [1, 8, 64], strides = [1, 1, 1]} : vector<2x8x64xf32> to vector<1x8x64xf32>
    %228 = vector.shape_cast %227 : vector<1x8x64xf32> to vector<8x64xf32>
    %c0_20 = arith.constant 0 : index
    %c0_21 = arith.constant 0 : index
    %229 = vector.load %arg3[%c0_20, %c0_21] : memref<32x64xf32, #tpu.memory_space<vmem>>, vector<32x64xf32>
    %cst_22 = arith.constant dense<0.000000e+00> : vector<8x32xf32>
    %230 = tpu.matmul %228, %229, %cst_22 {dimension_numbers = #tpu.dot_dimension_numbers<[1], [1], [0], [0], [0, 0, 1, 0], [], []>} : vector<8x64xf32>, vector<32x64xf32>, vector<8x32xf32> -> vector<8x32xf32>
    %231 = vector.broadcast %226 : vector<1x32xf32> to vector<8x32xf32>
    %232 = arith.addf %230, %231 : vector<8x32xf32>
    %cst_23 = arith.constant 0.000000e+00 : f32
    %233 = vector.broadcast %cst_23 : f32 to vector<8x32xf32>
    %234 = arith.maximumf %232, %233 : vector<8x32xf32>
    %c0_24 = arith.constant 0 : index
    %c0_25 = arith.constant 0 : index
    %c0_26 = arith.constant 0 : index
    %235 = vector.load %arg5[%c0_24, %c0_25, %c0_26] : memref<2x8x32xf32, #tpu.memory_space<vmem>>, vector<1x8x32xf32>
    %236 = vector.shape_cast %235 : vector<1x8x32xf32> to vector<8x32xf32>
    %237 = vector.shape_cast %234 : vector<8x32xf32> to vector<1x8x32xf32>
    tpu.vector_store %arg5[%c0_24, %c0_25, %c0_26], %237 {strides = array<i32>} : memref<2x8x32xf32, #tpu.memory_space<vmem>>, vector<1x8x32xf32>,
    %238 = vector.extract_strided_slice %225 {offsets = [1, 0, 0], sizes = [1, 8, 64], strides = [1, 1, 1]} : vector<2x8x64xf32> to vector<1x8x64xf32>
    %239 = vector.shape_cast %238 : vector<1x8x64xf32> to vector<8x64xf32>
    %c0_27 = arith.constant 0 : index
    %c0_28 = arith.constant 0 : index
    %240 = vector.load %arg3[%c0_27, %c0_28] : memref<32x64xf32, #tpu.memory_space<vmem>>, vector<32x64xf32>
    %cst_29 = arith.constant dense<0.000000e+00> : vector<8x32xf32>
    %241 = tpu.matmul %239, %240, %cst_29 {dimension_numbers = #tpu.dot_dimension_numbers<[1], [1], [0], [0], [0, 0, 1, 0], [], []>} : vector<8x64xf32>, vector<32x64xf32>, vector<8x32xf32> -> vector<8x32xf32>
    %242 = vector.broadcast %226 : vector<1x32xf32> to vector<8x32xf32>
    %243 = arith.addf %241, %242 : vector<8x32xf32>
    %cst_30 = arith.constant 0.000000e+00 : f32
    %244 = vector.broadcast %cst_30 : f32 to vector<8x32xf32>
    %245 = arith.maximumf %243, %244 : vector<8x32xf32>
    %c1_31 = arith.constant 1 : index
    %c0_32 = arith.constant 0 : index
    %c0_33 = arith.constant 0 : index
    %246 = vector.load %arg5[%c1_31, %c0_32, %c0_33] : memref<2x8x32xf32, #tpu.memory_space<vmem>>, vector<1x8x32xf32>
    %247 = vector.shape_cast %246 : vector<1x8x32xf32> to vector<8x32xf32>
    %248 = vector.shape_cast %245 : vector<8x32xf32> to vector<1x8x32xf32>
    tpu.vector_store %arg5[%c1_31, %c0_32, %c0_33], %248 {strides = array<i32>} : memref<2x8x32xf32, #tpu.memory_space<vmem>>, vector<1x8x32xf32>,
    return
  }
}

</mosaic_0001>

<bundles_post_ra>
// kernel: mul.0
= control target key start
LH: loop header
LB: loop body
LE: loop exit
PB: predicated region body
PF: predicated region fallthrough
CT: control target
= control target key end

     0   :  { %s34_s0 = inlined_call_operand.vmem [shape: f32[36], index: 0, kind: input, shape index: {}]   ;;  %s35_s1 = inlined_call_operand.vmem [shape: f32[36], index: 1, kind: input, shape index: {}]   ;;  %s36_s2 = inlined_call_operand.vmem [shape: f32[36], index: 2, kind: output, shape index: {}]  }
   0x1   :  { %v3_v0 = vld [vmem:[%s34_s0] sm:$0x1] }
   0x2   :  { %v4_v1 = vld [vmem:[%s35_s1] sm:$0x1] }
   0x3   :  { %v7_v2 = vmul.f32 %v4_v1, %v3_v0 }
   0x5   :  { %9 = vst [vmem:[%s36_s2] sm:$0x1] %v7_v2 }

// kernel: cnn_forward.1
= control target key start
LH: loop header
LB: loop body
LE: loop exit
PB: predicated region body
PF: predicated region fallthrough
CT: control target
= control target key end

     0   :  { %s1416_s0 = inlined_call_operand.vmem [shape: f32[2,8,16], index: 0, kind: input, shape index: {}]   ;;  %s1417_s1 = inlined_call_operand.vmem [shape: f32[36], index: 1, kind: input, shape index: {}]   ;;  %s1418_s2 = inlined_call_operand.vmem [shape: f32[4], index: 2, kind: input, shape index: {}]   ;;  %s1419_s3 = inlined_call_operand.vmem [shape: f32[32,64], index: 3, kind: input, shape index: {}]   ;;  %s1420_s4 = inlined_call_operand.vmem [shape: f32[1,32], index: 4, kind: input, shape index: {}]   ;;  %s1421_s5 = inlined_call_operand.hbm [shape: f32[2,8,32], index: 5, kind: output, shape index: {}]  }
   0x1   :  { %1422 = sst [smem:[#allocation11_spill]] %s1421_s5 }
   0x2   :  { %10 = vsyncpa [#allocation4], 0 }
   0x3   :  { %11 = vsyncpa [#allocation6], 0 }
   0x4   :  { %12 = vsyncpa [#allocation3], 0  ;;  %s21_s20 = sshll.u32 %s1417_s1, 4  ;;  %s31_s23 = sshll.u32 %s1418_s2, 4  ;;  %s22_s20 = int_to_ptr.vmem [resolvable:$true] %s21_s20  ;;  %s32_s23 = int_to_ptr.vmem [resolvable:$true] %s31_s23 }
   0x5   :  { %s838_s24 = scalar_lea.vmem %s22_s20, 16  ;;  %p843_p1 = scmp.lt.s32.totalorder %s22_s20, %s22_s20 }
   0x6   :  { %p839_p0 = scmp.ne.s32.totalorder %s22_s20, %s838_s24  ;;  %p844_p2 = scmp.lt.s32.totalorder %s838_s24, %s838_s24 }
   0x8   :  { %p845_p3 = por %p844_p2, %p843_p1 }
   0xa   :  { %p846_p4 = pnand %p845_p3, %p839_p0 }
   0xc   :  { %849 = shalt.err (!%p846_p4)
}
   0xd   :  { %s888_s25 = smov [#allocation2]   ;;  %s850_s26 = scalar_lea.vmem %s32_s23, 16 }
   0xe   :  { %24 = dma.vmem_to_smem %s22_s20, 16, %s888_s25, [#allocation4]  }
   0xf   :  { %p851_p5 = scmp.ne.s32.totalorder %s32_s23, %s850_s26  ;;  %p855_p6 = scmp.lt.s32.totalorder %s32_s23, %s32_s23 }
  0x10   :  { %p856_p7 = scmp.lt.s32.totalorder %s850_s26, %s850_s26 }
  0x12   :  { %p857_p8 = por %p856_p7, %p855_p6 }
  0x14   :  { %p858_p9 = pnand %p857_p8, %p851_p5 }
  0x16   :  { %861 = shalt.err (!%p858_p9)
}
  0x17   :  { %s889_s1 = smov [#allocation5]  }
  0x18   :  { %34 = dma.vmem_to_smem %s32_s23, 16, %s889_s1, [#allocation6]  }
  0x19   :  { %882 = dma.done.wait [#allocation4], 16  }
  0x1a   :  { %883 = vsyncadd [#allocation4], 4294967280 }
  0x1b   :  { %884 = dma.done.wait [#allocation6], 16  }
  0x1c   :  { %885 = vsyncadd [#allocation6], 4294967280 }
  0x1d   :  { %45 = sfence }
  0x1e   :  { %v939_v0 = vld [vmem:[%s1416_s0] sm:$0xff]  ;;  %vm54_vm0 = vcmask 1040384   ;;  %v944_v1 = vld [vmem:[%s1416_s0 + $0x8] sm:$0xff]  ;;  %s890_s30 = smov 127   ;;  %s891_s6 = smov 1   ;;  %vm61_vm1 = vcmask 1046528  }
  0x1f   :  { %v50_v2 = vrot.slane %v939_v0, 7  ;;  %v51_v3 = vrot.slane %v944_v1, 7  ;;  %v58_v6 = vrot.slane %v944_v1, 1  ;;  %v57_v7 = vrot.slane %v939_v0, 1  ;;  %s974_s0 = sld [smem:[#allocation2 + $0x2]] }
  0x20   :  { %s976_s7 = sld [smem:[#allocation2 + $0xb]]  ;;  %vm81_vm2 = vcmask 121856   ;;  %vm72_vm3 = vcmask 7168   ;;  %vm547_vm4 = vcmask 523264   ;;  %vm896_vm5 = vmmov 0  }
  0x21   :  { %v949_v4 = vsel %vm54_vm0, 0.0, %v50_v2  ;;  %v954_v5 = vsel %vm54_vm0, 0.0, %v51_v3  ;;  %v965_v8 = vsel %vm61_vm1, %v58_v6, 0.0  ;;  %v968_v9 = vsel %vm61_vm1, %v57_v7, 0.0  ;;  %s978_s8 = sld [smem:[#allocation2 + $0x14]] }
  0x22   :  { %75 = vrot.lane.b32.xlu1 %v949_v4, %s890_s30  ;;  %66 = vrot.lane.b32.xlu0 %v949_v4, %s891_s6  ;;  %s980_s9 = sld [smem:[#allocation2 + $0x1d]]  ;;  %vm376_vm6 = vcmask 130048   ;;  %vm379_vm7 = vcmask 261120   ;;  %vm382_vm8 = vcmask 392192   ;;  %vm519_vm9 = vcmask 1041408  }
  0x23   :  { %s982_s10 = sld [smem:[#allocation2]]  ;;  %vm522_vm10 = vcmask 1042432   ;;  %vm525_vm11 = vcmask 1043456   ;;  %vm528_vm12 = vcmask 1044480   ;;  %vm531_vm13 = vcmask 1045504  }
  0x24   :  { %s984_s11 = sld [smem:[#allocation2 + $0x1]] }
  0x25   :  { %s986_s12 = sld [smem:[#allocation2 + $0x9]]  ;;  %v135_v11 = vstv %s974_s0 }
  0x26   :  { %77 = vrot.lane.b32.xlu1 %v954_v5, %s890_s30  ;;  %68 = vrot.lane.b32.xlu0 %v954_v5, %s891_s6  ;;  %s988_s13 = sld [smem:[#allocation2 + $0xa]]  ;;  %v193_v12 = vstv %s976_s7 }
  0x27   :  { %s990_s14 = sld [smem:[#allocation2 + $0x12]]  ;;  %v251_v14 = vstv %s978_s8  ;;  %s892_s8 = smov 16  }
  0x28   :  { %s992_s15 = sld [smem:[#allocation2 + $0x13]]  ;;  %v309_v15 = vstv %s980_s9 }
  0x29   :  { %s994_s16 = sld [smem:[#allocation2 + $0x1b]]  ;;  %v127_v16 = vstv %s982_s10  ;;  %s893_s10 = smov 32  }
  0x2a   :  { %86 = vrot.lane.b32.xlu1 %v944_v1, %s891_s6  ;;  %84 = vrot.lane.b32.xlu0 %v939_v0, %s891_s6  ;;  %s996_s17 = sld [smem:[#allocation2 + $0x1c]]  ;;  %v130_v10 = vstv %s984_s11 }
  0x2b   :  { %s998_s18 = sld [smem:[#allocation2 + $0x3]]  ;;  %v185_v18 = vstv %s986_s12  ;;  %v1043_v20 = vmul.f32 %v130_v10, %v949_v4  ;;  %v1046_v21 = vmul.f32 %v130_v10, %v954_v5 }
  0x2c   :  { %s1000_s19 = sld [smem:[#allocation2 + $0xc]]  ;;  %v188_v13 = vstv %s988_s13 }
  0x2d   :  { %s1002_s20 = sld [smem:[#allocation2 + $0x15]]  ;;  %v243_v22 = vstv %s990_s14  ;;  %v189_v24 = vmul.f32 %v188_v13, %v949_v4  ;;  %v1054_v25 = vmul.f32 %v188_v13, %v954_v5  ;;  %s894_s14 = smov 48  }
  0x2e   :  { %94 = vrot.lane.b32.xlu1 %v944_v1, %s890_s30  ;;  %92 = vrot.lane.b32.xlu0 %v939_v0, %s890_s30  ;;  %s1004_s21 = sld [smem:[#allocation2 + $0x1e]]  ;;  %v246_v17 = vstv %s992_s15 }
  0x2f   :  { %s1006_s22 = sld [smem:[#allocation2 + $0x4]]  ;;  %v301_v23 = vstv %s994_s16  ;;  %v247_v26 = vmul.f32 %v246_v17, %v949_v4  ;;  %v1060_v27 = vmul.f32 %v246_v17, %v954_v5 }
  0x30   :  { %s1008_s23 = sld [smem:[#allocation2 + $0x5]]  ;;  %v304_v19 = vstv %s996_s17 }
  0x31   :  { %s1010_s24 = sld [smem:[#allocation2 + $0xd]]  ;;  %v305_v30 = vmul.f32 %v304_v19, %v949_v4  ;;  %v1068_v31 = vmul.f32 %v304_v19, %v954_v5  ;;  %v140_v32 = vstv %s998_s18 }
  0x32   :  { %104 = vrot.lane.b32.xlu1 %v965_v8, %s891_s6  ;;  %102 = vrot.lane.b32.xlu0 %v968_v9, %s891_s6  ;;  %s1012_s25 = sld [smem:[#allocation2 + $0xe]]  ;;  %v198_v34 = vstv %s1000_s19 }
  0x33   :  { %s1014_s26 = sld [smem:[#allocation2 + $0x16]]  ;;  %v256_v35 = vstv %s1002_s20 }
  0x34   :  { %s1016_s1 = sld [smem:[#allocation2 + $0x17]]  ;;  %v314_v36 = vstv %s1004_s21 }
  0x35   :  { %s1018_s2 = sld [smem:[#allocation2 + $0x1f]]  ;;  %v145_v28 = vstv %s1006_s22 }
  0x36   :  { %112 = vrot.lane.b32.xlu1 %v965_v8, %s890_s30  ;;  %110 = vrot.lane.b32.xlu0 %v968_v9, %s890_s30  ;;  %s1020_s27 = sld [smem:[#allocation2 + $0x20]]  ;;  %v1079_v38 = vmul.f32 %v145_v28, %v944_v1  ;;  %v150_v39 = vstv %s1008_s23  ;;  %v1086_v41 = vmul.f32 %v145_v28, %v939_v0 }
  0x37   :  { %s1022_s28 = sld [smem:[#allocation2 + $0x6]]  ;;  %v203_v29 = vstv %s1010_s24 }
  0x38   :  { %s1024_s29 = sld [smem:[#allocation2 + $0xf]]  ;;  %v1083_v40 = vmul.f32 %v203_v29, %v944_v1  ;;  %v208_v42 = vstv %s1012_s25  ;;  %v1095_v44 = vmul.f32 %v203_v29, %v939_v0 }
  0x39   :  { %s1027_s30 = sld [smem:[#allocation2 + $0x18]]  ;;  %v261_v33 = vstv %s1014_s26 }
  0x3a   :  { %s1032_s6 = sld [smem:[#allocation2 + $0x7]]  ;;  %v1092_v43 = vmul.f32 %v261_v33, %v944_v1  ;;  %v266_v46 = vstv %s1016_s1  ;;  %v1104_v49 = vmul.f32 %v261_v33, %v939_v0 }
  0x3b   :  { %s1038_s5 = sld [smem:[#allocation2 + $0x10]]  ;;  %v319_v37 = vstv %s1018_s2  ;;  %s897_s2 = smov [#allocation7]  }
  0x3c   :  { %s1048_s11 = sld [smem:[#allocation2 + $0x19]]  ;;  %v1100_v47 = vmul.f32 %v319_v37, %v944_v1  ;;  %v324_v48 = vstv %s1020_s27  ;;  %v1107_v50 = vmul.f32 %v319_v37, %v939_v0  ;;  %s732_s27 = sshll.u32 %s897_s2, 4  ;;  %s733_s27 = int_to_ptr.vmem [resolvable:$true] %s732_s27 }
  0x3d   :  { %s1056_s13 = sld [smem:[#allocation2 + $0x21]]  ;;  %v155_v51 = vstv %s1022_s28  ;;  %s862_s28 = scalar_lea.vmem %s733_s27, 256 }
  0x3e   :  { %s1064_s15 = sld [smem:[#allocation2 + $0x8]]  ;;  %v213_v56 = vstv %s1024_s29  ;;  %p863_p10 = scmp.ne.s32.totalorder %s733_s27, %s862_s28 }
  0x3f   :  { %s1072_s17 = sld [smem:[#allocation2 + $0x11]]  ;;  %p867_p11 = scmp.lt.s32.totalorder %s733_s27, %s733_s27 }
  0x40   :  { %s1088_s22 = sld [smem:[#allocation2 + $0x22]]  ;;  %v160_v45 = vstv %s1032_s6  ;;  %p868_p12 = scmp.lt.s32.totalorder %s862_s28, %s862_s28 }
  0x41   :  { %v218_v52 = vstv %s1038_s5  ;;  %v1116_v59 = vmul.f32 %v160_v45, %v965_v8  ;;  %v1122_v63 = vmul.f32 %v160_v45, %v968_v9  ;;  %s1224_s5 = sld [smem:[#allocation5]] }
  0x42   :  { %v276_v53 = vstv %s1048_s11  ;;  %v1125_v0 = vmul.f32 %v218_v52, %v965_v8  ;;  %v1132_v3 = vmul.f32 %v218_v52, %v968_v9  ;;  %s1242_s0 = sld [smem:[#allocation5 + $0x1]]  ;;  %p869_p13 = por %p868_p12, %p867_p11 }
  0x43   :  { %v1129_v2 = vmul.f32 %v276_v53, %v965_v8  ;;  %v1148_v29 = vmul.f32 %v276_v53, %v968_v9  ;;  %s771_s7 = sld [smem:[#allocation2 + $0x1a]] }
  0x44   :  { %s772_s9 = sld [smem:[#allocation5 + $0x2]]  ;;  %p870_p0 = pnand %p869_p13, %p863_p10 }
  0x45   :  { %s781_s12 = sld [smem:[#allocation2 + $0x23]] }
  0x46   :  { %v334_v28 = vstv %s1088_s22  ;;  %s782_s16 = sld [smem:[#allocation5 + $0x3]] }
  0x94   :  { %v76_v54 = vpop.permute.xlu1 %75  ;;  %v67_v55 = vpop.permute.xlu0 %66 }
  0x95   :  { %v82_v60 = vsel %vm81_vm2, %v76_v54, 0.0  ;;  %v73_v61 = vsel %vm72_vm3, 0.0, %v67_v55 }
  0x96   :  { %v128_v4 = vmul.f32 %v127_v16, %v73_v61  ;;  %v186_v5 = vmul.f32 %v185_v18, %v73_v61  ;;  %v244_v6 = vmul.f32 %v243_v22, %v73_v61  ;;  %v302_v7 = vmul.f32 %v301_v23, %v73_v61 }
  0x97   :  { %v136_v10 = vmul.f32 %v135_v11, %v82_v60  ;;  %v194_v13 = vmul.f32 %v193_v12, %v82_v60  ;;  %v252_v33 = vmul.f32 %v251_v14, %v82_v60  ;;  %v310_v37 = vmul.f32 %v309_v15, %v82_v60 }
  0x98   :  { %v78_v17 = vpop.permute.xlu1 %77  ;;  %v69_v19 = vpop.permute.xlu0 %68  ;;  %v133_v45 = vadd.f32 %v1043_v20, %v128_v4  ;;  %v191_v52 = vadd.f32 %v189_v24, %v186_v5  ;;  %v249_v54 = vadd.f32 %v247_v26, %v244_v6  ;;  %v307_v55 = vadd.f32 %v305_v30, %v302_v7 }
  0x99   :  { %v83_v61 = vsel %vm81_vm2, %v78_v17, 0.0  ;;  %v74_v1 = vsel %vm72_vm3, 0.0, %v69_v19 }
  0x9a   :  { %v137_v62 = vmul.f32 %v135_v11, %v83_v61  ;;  %v195_v58 = vmul.f32 %v193_v12, %v83_v61  ;;  %v253_v53 = vmul.f32 %v251_v14, %v83_v61  ;;  %v311_v57 = vmul.f32 %v309_v15, %v83_v61 }
  0x9b   :  { %v129_v60 = vmul.f32 %v127_v16, %v74_v1  ;;  %v187_v20 = vmul.f32 %v185_v18, %v74_v1  ;;  %v245_v24 = vmul.f32 %v243_v22, %v74_v1  ;;  %v303_v26 = vmul.f32 %v301_v23, %v74_v1 }
  0x9c   :  { %v87_v30 = vpop.permute.xlu1 %86  ;;  %v85_v11 = vpop.permute.xlu0 %84  ;;  %v138_v4 = vadd.f32 %v136_v10, %v133_v45  ;;  %v196_v15 = vadd.f32 %v194_v13, %v191_v52 }
  0x9d   :  { %v91_v12 = vsel %vm72_vm3, 0.0, %v87_v30  ;;  %v90_v14 = vsel %vm72_vm3, 0.0, %v85_v11  ;;  %v134_v16 = vadd.f32 %v1046_v21, %v129_v60  ;;  %v192_v18 = vadd.f32 %v1054_v25, %v187_v20 }
  0x9e   :  { %v250_v5 = vadd.f32 %v1060_v27, %v245_v24  ;;  %v308_v22 = vadd.f32 %v1068_v31, %v303_v26  ;;  %v142_v23 = vmul.f32 %v140_v32, %v91_v12  ;;  %v200_v1 = vmul.f32 %v198_v34, %v91_v12 }
  0x9f   :  { %v258_v6 = vmul.f32 %v256_v35, %v91_v12  ;;  %v316_v7 = vmul.f32 %v314_v36, %v91_v12  ;;  %v139_v10 = vadd.f32 %v137_v62, %v134_v16  ;;  %v197_v17 = vadd.f32 %v195_v58, %v192_v18 }
  0xa0   :  { %v255_v13 = vadd.f32 %v253_v53, %v250_v5  ;;  %v313_v21 = vadd.f32 %v311_v57, %v308_v22  ;;  %v95_v19 = vpop.permute.xlu1 %94  ;;  %v141_v25 = vmul.f32 %v140_v32, %v90_v14  ;;  %v199_v27 = vmul.f32 %v198_v34, %v90_v14  ;;  %v93_v52 = vpop.permute.xlu0 %92 }
  0xa1   :  { %v254_v31 = vadd.f32 %v252_v33, %v249_v54  ;;  %v257_v45 = vmul.f32 %v256_v35, %v90_v14  ;;  %v144_v61 = vadd.f32 %v142_v23, %v139_v10  ;;  %v202_v60 = vadd.f32 %v200_v1, %v197_v17 }
  0xa2   :  { %v260_v20 = vadd.f32 %v258_v6, %v255_v13  ;;  %v318_v58 = vadd.f32 %v316_v7, %v313_v21  ;;  %v143_v62 = vadd.f32 %v141_v25, %v138_v4  ;;  %v201_v53 = vadd.f32 %v199_v27, %v196_v15 }
  0xa3   :  { %v259_v57 = vadd.f32 %v257_v45, %v254_v31  ;;  %v312_v24 = vadd.f32 %v310_v37, %v307_v55  ;;  %v315_v32 = vmul.f32 %v314_v36, %v90_v14  ;;  %v99_v34 = vsel %vm81_vm2, %v95_v19, 0.0 }
  0xa4   :  { %v149_v33 = vadd.f32 %v1079_v38, %v144_v61  ;;  %v207_v35 = vadd.f32 %v1083_v40, %v202_v60  ;;  %v152_v54 = vmul.f32 %v150_v39, %v99_v34  ;;  %v210_v26 = vmul.f32 %v208_v42, %v99_v34  ;;  %v105_v40 = vpop.permute.xlu1 %104  ;;  %v103_v15 = vpop.permute.xlu0 %102 }
  0xa5   :  { %v265_v30 = vadd.f32 %v1092_v43, %v260_v20  ;;  %v268_v11 = vmul.f32 %v266_v46, %v99_v34  ;;  %v317_v37 = vadd.f32 %v315_v32, %v312_v24  ;;  %v323_v36 = vadd.f32 %v1100_v47, %v318_v58 }
  0xa6   :  { %v326_v55 = vmul.f32 %v324_v48, %v99_v34  ;;  %v98_v38 = vsel %vm81_vm2, %v93_v52, 0.0  ;;  %v154_v12 = vadd.f32 %v152_v54, %v149_v33  ;;  %v212_v14 = vadd.f32 %v210_v26, %v207_v35 }
  0xa7   :  { %v148_v4 = vadd.f32 %v1086_v41, %v143_v62  ;;  %v336_v43 = vmul.f32 %v334_v28, %v965_v8  ;;  %v270_v16 = vadd.f32 %v268_v11, %v265_v30  ;;  %v151_v18 = vmul.f32 %v150_v39, %v98_v38 }
  0xa8   :  { %v206_v47 = vadd.f32 %v1095_v44, %v201_v53  ;;  %v209_v5 = vmul.f32 %v208_v42, %v98_v38  ;;  %v264_v22 = vadd.f32 %v1104_v49, %v259_v57  ;;  %v267_v41 = vmul.f32 %v266_v46, %v98_v38  ;;  %v113_v19 = vpop.permute.xlu1 %112 }
  0xa9   :  { %v322_v23 = vadd.f32 %v1107_v50, %v317_v37  ;;  %v325_v8 = vmul.f32 %v324_v48, %v98_v38  ;;  %v328_v1 = vadd.f32 %v326_v55, %v323_v36  ;;  %v153_v39 = vadd.f32 %v151_v18, %v148_v4 }
  0xaa   :  { %v109_v44 = vsel %vm72_vm3, 0.0, %v105_v40  ;;  %v108_v6 = vsel %vm72_vm3, 0.0, %v103_v15  ;;  %v211_v42 = vadd.f32 %v209_v5, %v206_v47  ;;  %v269_v7 = vadd.f32 %v267_v41, %v264_v22 }
  0xab   :  { %v157_v49 = vmul.f32 %v155_v51, %v109_v44  ;;  %v215_v46 = vmul.f32 %v213_v56, %v109_v44  ;;  %v1423_v10 = vstv %s1027_s30  ;;  %v1424_v17 = vstv %s1056_s13 }
  0xac   :  { %v273_v50 = vmul.f32 %v1423_v10, %v109_v44  ;;  %v331_v48 = vmul.f32 %v1424_v17, %v109_v44  ;;  %v156_v13 = vmul.f32 %v155_v51, %v108_v6  ;;  %v214_v21 = vmul.f32 %v213_v56, %v108_v6  ;;  %v111_v51 = vpop.permute.xlu0 %110 }
  0xad   :  { %v327_v25 = vadd.f32 %v325_v8, %v322_v23  ;;  %v159_v27 = vadd.f32 %v157_v49, %v154_v12  ;;  %v217_v31 = vadd.f32 %v215_v46, %v212_v14  ;;  %v1425_v45 = vmov %v1423_v10 }
  0xae   :  { %v272_v52 = vmul.f32 %v1425_v45, %v108_v6  ;;  %v275_v61 = vadd.f32 %v273_v50, %v270_v16  ;;  %v333_v60 = vadd.f32 %v331_v48, %v328_v1  ;;  %v158_v20 = vadd.f32 %v156_v13, %v153_v39 }
  0xaf   :  { %v1426_v58 = vmov %v1424_v17  ;;  %v216_v56 = vadd.f32 %v214_v21, %v211_v42  ;;  %v1247_v57 = vsel %vm81_vm2, %v113_v19, 0.0  ;;  %v164_v24 = vadd.f32 %v1116_v59, %v159_v27 }
  0xb0   :  { %v330_v62 = vmul.f32 %v1426_v58, %v108_v6  ;;  %v274_v53 = vadd.f32 %v272_v52, %v269_v7  ;;  %v1427_v32 = vstv %s1064_s15  ;;  %v222_v33 = vadd.f32 %v1125_v0, %v217_v31 }
  0xb1   :  { %v167_v34 = vmul.f32 %v1427_v32, %v1247_v57  ;;  %v1428_v35 = vstv %s1072_s17  ;;  %v280_v26 = vadd.f32 %v1129_v2, %v275_v61  ;;  %v171_v30 = vstv %s1224_s5 }
  0xb2   :  { %v225_v54 = vmul.f32 %v1428_v35, %v1247_v57  ;;  %v1259_v11 = vadd.f32 %v336_v43, %v333_v60  ;;  %v335_v37 = vmul.f32 %v334_v28, %v968_v9  ;;  %v116_v36 = vsel %vm81_vm2, %v111_v51, 0.0 }
  0xb3   :  { %v332_v59 = vadd.f32 %v330_v62, %v327_v25  ;;  %v169_v55 = vadd.f32 %v167_v34, %v164_v24  ;;  %v163_v38 = vadd.f32 %v1122_v63, %v158_v20  ;;  %v1429_v40 = vmov %v1427_v32 }
  0xb4   :  { %v166_v0 = vmul.f32 %v1429_v40, %v116_v36  ;;  %v221_v12 = vadd.f32 %v1132_v3, %v216_v56  ;;  %v1430_v14 = vmov %v1428_v35  ;;  %v227_v2 = vadd.f32 %v225_v54, %v222_v33  ;;  %v539_v54 = vld [vmem:[%s1419_s3 + $0x10] sm:$0xff] }
  0xb5   :  { %v224_v4 = vmul.f32 %v1430_v14, %v116_v36  ;;  %v173_v15 = vadd.f32 %v171_v30, %v169_v55  ;;  %v279_v43 = vadd.f32 %v1148_v29, %v274_v53  ;;  %v229_v18 = vstv %s1242_s0 }
  0xb6   :  { %v168_v16 = vadd.f32 %v166_v0, %v163_v38  ;;  %v337_v5 = vadd.f32 %v335_v37, %v332_v59  ;;  %v231_v22 = vadd.f32 %v229_v18, %v227_v2  ;;  %v281_v1 = vstv %s771_s7  ;;  %v537_v38 = vld [vmem:[%s1419_s3] sm:$0xff] }
  0xb7   :  { %v1273_v9 = vmax.f32 %v173_v15, 0.0  ;;  %v226_v47 = vadd.f32 %v224_v4, %v221_v12  ;;  %v283_v6 = vmul.f32 %v281_v1, %v1247_v57  ;;  %v282_v7 = vmul.f32 %v281_v1, %v116_v36 }
  0xb8   :  { %v172_v28 = vadd.f32 %v171_v30, %v168_v16  ;;  %v1280_v8 = vmax.f32 %v231_v22, 0.0  ;;  %v287_v50 = vstv %s772_s9  ;;  %v339_v19 = vstv %s781_s12 }
  0xb9   :  { %v353_v41 = vrot.slane %v1273_v9, 1  ;;  %v230_v3 = vadd.f32 %v229_v18, %v226_v47  ;;  %v361_v29 = vrot.slane %v1273_v9, 2  ;;  %v285_v46 = vadd.f32 %v283_v6, %v280_v26 }
  0xba   :  { %v1275_v63 = vmax.f32 %v172_v28, 0.0  ;;  %v388_v42 = vrot.slane %v1280_v8, 1  ;;  %v369_v10 = vrot.slane %v1273_v9, 3  ;;  %v284_v17 = vadd.f32 %v282_v7, %v279_v43 }
  0xbb   :  { %356 = vrot.lane.b32.xlu1 %v353_v41, %s892_s8  ;;  %v1284_v39 = vmax.f32 %v230_v3, 0.0  ;;  %v289_v13 = vadd.f32 %v287_v50, %v285_v46  ;;  %v396_v21 = vrot.slane %v1280_v8, 2  ;;  %v341_v45 = vmul.f32 %v339_v19, %v1247_v57  ;;  %v540_v57 = vld [vmem:[%s1419_s3 + $0x18] sm:$0xff] }
  0xbc   :  { %v352_v23 = vrot.slane %v1275_v63, 1  ;;  %v360_v44 = vrot.slane %v1275_v63, 2  ;;  %v368_v48 = vrot.slane %v1275_v63, 3  ;;  %v288_v25 = vadd.f32 %v287_v50, %v284_v17 }
  0xbd   :  { %v387_v49 = vrot.slane %v1284_v39, 1  ;;  %v395_v27 = vrot.slane %v1284_v39, 2  ;;  %v1301_v31 = vmax.f32 %v289_v13, 0.0  ;;  %v404_v52 = vrot.slane %v1280_v8, 3 }
  0xbe   :  { %354 = vrot.lane.b32.xlu0 %v352_v23, %s892_s8  ;;  %v1306_v61 = vmax.f32 %v288_v25, 0.0  ;;  %v340_v60 = vmul.f32 %v339_v19, %v116_v36  ;;  %v403_v20 = vrot.slane %v1284_v39, 3  ;;  %v343_v58 = vadd.f32 %v341_v45, %v1259_v11  ;;  %v538_v36 = vld [vmem:[%s1419_s3 + $0x8] sm:$0xff] }
  0xbf   :  { %364 = vrot.lane.b32.xlu1 %v361_v29, %s893_s10  ;;  %v420_v62 = vrot.slane %v1301_v31, 1  ;;  %v345_v51 = vstv %s782_s16  ;;  %v428_v32 = vrot.slane %v1301_v31, 2  ;;  %v895_v34 = vmov 0.0  }
  0xc0   :  { %v342_v56 = vadd.f32 %v340_v60, %v337_v5  ;;  %v419_v53 = vrot.slane %v1306_v61, 1  ;;  %v347_v24 = vadd.f32 %v345_v51, %v343_v58  ;;  %804 = vmatprep.subr.mxu0 %v895_v34  ;;  %815 = vmatprep.subr.mxu1 %v895_v34  ;;  %v427_v35 = vrot.slane %v1306_v61, 2 }
  0xc1   :  { %805 = vmatpush3.xpose.msk.msra.mxu0 %vm547_vm4, %v540_v57  ;;  %816 = vmatpush3.xpose.msk.msra.mxu1 %vm547_vm4, %v540_v57  ;;  %v436_v30 = vrot.slane %v1301_v31, 3  ;;  %v435_v37 = vrot.slane %v1306_v61, 3 }
  0xc2   :  { %362 = vrot.lane.b32.xlu0 %v360_v44, %s893_s10  ;;  %v346_v33 = vadd.f32 %v345_v51, %v342_v56  ;;  %806 = vmatprep.subr.mxu0 %v895_v34  ;;  %v1327_v26 = vmax.f32 %v347_v24, 0.0 }
  0xc3   :  { %391 = vrot.lane.b32.xlu1 %v388_v42, %s892_s8  ;;  %817 = vmatprep.subr.mxu1 %v895_v34 }
  0xc4   :  { %v1332_v11 = vmax.f32 %v346_v33, 0.0  ;;  %v452_v59 = vrot.slane %v1327_v26, 1  ;;  %812 = vmatprep.mubr.msk.f32.mxu0 %vm896_vm5, %v895_v34  ;;  %v460_v40 = vrot.slane %v1327_v26, 2  ;;  %823 = vmatprep.mubr.msk.f32.mxu1 %vm896_vm5, %v895_v34  ;;  %v468_v12 = vrot.slane %v1327_v26, 3 }
  0xc5   :  { %807 = vmatpush3.xpose.msk.msra.mxu0 %vm547_vm4, %v539_v54  ;;  %818 = vmatpush3.xpose.msk.msra.mxu1 %vm547_vm4, %v539_v54 }
  0xc6   :  { %389 = vrot.lane.b32.xlu0 %v387_v49, %s892_s8  ;;  %808 = vmatprep.subr.mxu0 %v895_v34  ;;  %v451_v55 = vrot.slane %v1332_v11, 1  ;;  %v459_v0 = vrot.slane %v1332_v11, 2  ;;  %v467_v14 = vrot.slane %v1332_v11, 3 }
  0xc7   :  { %372 = vrot.lane.b32.xlu1 %v369_v10, %s894_s14  ;;  %819 = vmatprep.subr.mxu1 %v895_v34 }
  0xc9   :  { %809 = vmatpush3.xpose.msk.msra.mxu0 %vm547_vm4, %v538_v36  ;;  %820 = vmatpush3.xpose.msk.msra.mxu1 %vm547_vm4, %v538_v36 }
  0xca   :  { %370 = vrot.lane.b32.xlu0 %v368_v48, %s894_s14  ;;  %810 = vmatprep.subr.mxu0 %v895_v34 }
  0xcb   :  { %399 = vrot.lane.b32.xlu1 %v396_v21, %s893_s10  ;;  %821 = vmatprep.subr.mxu1 %v895_v34 }
  0xcd   :  { %811 = vmatpush3.xpose.msk.msra.mxu0 %vm547_vm4, %v537_v38  ;;  %822 = vmatpush3.xpose.msk.msra.mxu1 %vm547_vm4, %v537_v38 }
  0xce   :  { %397 = vrot.lane.b32.xlu0 %v395_v27, %s893_s10 }
  0xcf   :  { %407 = vrot.lane.b32.xlu1 %v404_v52, %s894_s14 }
  0xd2   :  { %405 = vrot.lane.b32.xlu0 %v403_v20, %s894_s14 }
  0xd3   :  { %423 = vrot.lane.b32.xlu1 %v420_v62, %s892_s8 }
  0xd6   :  { %421 = vrot.lane.b32.xlu0 %v419_v53, %s892_s8 }
  0xd7   :  { %431 = vrot.lane.b32.xlu1 %v428_v32, %s893_s10 }
  0xda   :  { %429 = vrot.lane.b32.xlu0 %v427_v35, %s893_s10 }
  0xdb   :  { %439 = vrot.lane.b32.xlu1 %v436_v30, %s894_s14 }
  0xde   :  { %437 = vrot.lane.b32.xlu0 %v435_v37, %s894_s14 }
  0xdf   :  { %455 = vrot.lane.b32.xlu1 %v452_v59, %s892_s8 }
  0xe2   :  { %453 = vrot.lane.b32.xlu0 %v451_v55, %s892_s8 }
  0xe3   :  { %463 = vrot.lane.b32.xlu1 %v460_v40, %s893_s10 }
  0xe6   :  { %461 = vrot.lane.b32.xlu0 %v459_v0, %s893_s10 }
  0xe7   :  { %471 = vrot.lane.b32.xlu1 %v468_v12, %s894_s14 }
  0xea   :  { %469 = vrot.lane.b32.xlu0 %v467_v14, %s894_s14 }
 0x12d   :  { %v357_v4 = vpop.permute.xlu1 %356 }
 0x12e   :  { %v378_v44 = vsel %vm376_vm6, %v1273_v9, %v357_v4 }
 0x130   :  { %v355_v15 = vpop.permute.xlu0 %354 }
 0x131   :  { %v365_v2 = vpop.permute.xlu1 %364  ;;  %v377_v49 = vsel %vm376_vm6, %v1275_v63, %v355_v15 }
 0x132   :  { %v381_v42 = vsel %vm379_vm7, %v378_v44, %v365_v2 }
 0x134   :  { %v363_v16 = vpop.permute.xlu0 %362 }
 0x135   :  { %v392_v43 = vpop.permute.xlu1 %391  ;;  %v380_v17 = vsel %vm379_vm7, %v377_v49, %v363_v16 }
 0x136   :  { %v412_v7 = vsel %vm376_vm6, %v1280_v8, %v392_v43 }
 0x138   :  { %v390_v18 = vpop.permute.xlu0 %389 }
 0x139   :  { %v373_v28 = vpop.permute.xlu1 %372  ;;  %v411_v48 = vsel %vm376_vm6, %v1284_v39, %v390_v18 }
 0x13a   :  { %v384_v46 = vsel %vm382_vm8, %v381_v42, %v373_v28 }
 0x13b   :  { %v484_v19 = vrot.slane %v384_v46, 3 }
 0x13c   :  { %v371_v47 = vpop.permute.xlu0 %370 }
 0x13d   :  { %v400_v5 = vpop.permute.xlu1 %399  ;;  %v383_v13 = vsel %vm382_vm8, %v380_v17, %v371_v47  ;;  %v518_v56 = vsel %vm54_vm0, %v384_v46, %v484_v19 }
 0x13e   :  { %v414_v10 = vsel %vm379_vm7, %v412_v7, %v400_v5  ;;  %v483_v60 = vrot.slane %v383_v13, 3 }
 0x140   :  { %v398_v22 = vpop.permute.xlu0 %397  ;;  %v517_v34 = vsel %vm54_vm0, %v383_v13, %v483_v60 }
 0x141   :  { %v408_v41 = vpop.permute.xlu1 %407  ;;  %v413_v21 = vsel %vm379_vm7, %v411_v48, %v398_v22 }
 0x142   :  { %v416_v9 = vsel %vm382_vm8, %v414_v10, %v408_v41 }
 0x143   :  { %v490_v27 = vrot.slane %v416_v9, 6  ;;  %v494_v53 = vrot.slane %v416_v9, 1 }
 0x144   :  { %v406_v3 = vpop.permute.xlu0 %405 }
 0x145   :  { %v424_v23 = vpop.permute.xlu1 %423  ;;  %v415_v63 = vsel %vm382_vm8, %v413_v21, %v406_v3  ;;  %v521_v57 = vsel %vm519_vm9, %v518_v56, %v490_v27 }
 0x146   :  { %v444_v25 = vsel %vm376_vm6, %v1301_v31, %v424_v23  ;;  %v489_v58 = vrot.slane %v415_v63, 6  ;;  %v493_v33 = vrot.slane %v415_v63, 1  ;;  %v524_v30 = vsel %vm522_vm10, %v521_v57, %v494_v53  ;;  %v783_v23 = vld [vmem:[%s1420_s4] ss:$0 sm:$0xff] }
 0x148   :  { %v422_v29 = vpop.permute.xlu0 %421 }
 0x149   :  { %v432_v1 = vpop.permute.xlu1 %431  ;;  %v443_v39 = vsel %vm376_vm6, %v1306_v61, %v422_v29  ;;  %v520_v61 = vsel %vm519_vm9, %v517_v34, %v489_v58 }
 0x14a   :  { %v446_v45 = vsel %vm379_vm7, %v444_v25, %v432_v1  ;;  %v523_v40 = vsel %vm522_vm10, %v520_v61, %v493_v33 }
 0x14c   :  { %v430_v6 = vpop.permute.xlu0 %429 }
 0x14d   :  { %v440_v50 = vpop.permute.xlu1 %439  ;;  %v445_v62 = vsel %vm379_vm7, %v443_v39, %v430_v6 }
 0x14e   :  { %v448_v20 = vsel %vm382_vm8, %v446_v45, %v440_v50 }
 0x14f   :  { %v500_v24 = vrot.slane %v448_v20, 4  ;;  %v504_v37 = vrot.slane %v448_v20, 7 }
 0x150   :  { %v438_v8 = vpop.permute.xlu0 %437 }
 0x151   :  { %v456_v52 = vpop.permute.xlu1 %455  ;;  %v447_v31 = vsel %vm382_vm8, %v445_v62, %v438_v8  ;;  %v527_v59 = vsel %vm525_vm11, %v524_v30, %v500_v24 }
 0x152   :  { %v499_v35 = vrot.slane %v447_v31, 4  ;;  %v476_v36 = vsel %vm376_vm6, %v1327_v26, %v456_v52  ;;  %v503_v0 = vrot.slane %v447_v31, 7  ;;  %v530_v43 = vsel %vm528_vm12, %v527_v59, %v504_v37 }
 0x154   :  { %v454_v51 = vpop.permute.xlu0 %453  ;;  %v526_v4 = vsel %vm525_vm11, %v523_v40, %v499_v35 }
 0x155   :  { %v464_v32 = vpop.permute.xlu1 %463  ;;  %v475_v12 = vsel %vm376_vm6, %v1332_v11, %v454_v51  ;;  %v529_v22 = vsel %vm528_vm12, %v526_v4, %v503_v0 }
 0x156   :  { %v478_v55 = vsel %vm379_vm7, %v476_v36, %v464_v32 }
 0x158   :  { %v462_v54 = vpop.permute.xlu0 %461 }
 0x159   :  { %v472_v38 = vpop.permute.xlu1 %471  ;;  %v477_v15 = vsel %vm379_vm7, %v475_v12, %v462_v54 }
 0x15a   :  { %v480_v14 = vsel %vm382_vm8, %v478_v55, %v472_v38 }
 0x15b   :  { %v510_v26 = vrot.slane %v480_v14, 2  ;;  %v514_v2 = vrot.slane %v480_v14, 5 }
 0x15c   :  { %v470_v16 = vpop.permute.xlu0 %469 }
 0x15d   :  { %v479_v18 = vsel %vm382_vm8, %v477_v15, %v470_v16  ;;  %v533_v5 = vsel %vm531_vm13, %v530_v43, %v510_v26 }
 0x15e   :  { %v509_v28 = vrot.slane %v479_v18, 2  ;;  %v513_v47 = vrot.slane %v479_v18, 5  ;;  %v535_v11 = vsel %vm61_vm1, %v533_v5, %v514_v2 }
 0x15f   :  { %824 = vmatmul.mubr.msk.f32.vlgmr.msra.gmra.mxu1 %vm547_vm4, %v535_v11 }
 0x160   :  { %v532_v41 = vsel %vm531_vm13, %v529_v22, %v509_v28 }
 0x161   :  { %v534_v3 = vsel %vm61_vm1, %v532_v41, %v513_v47 }
 0x162   :  { %813 = vmatmul.mubr.msk.f32.vlgmr.msra.gmra.mxu0 %vm547_vm4, %v534_v3 }
 0x21f   :  { %v720_v29 = vpop.f32.mrf.mxu1 }
 0x220   :  { %v721_v1 = vadd.f32 %v783_v23, %v720_v29 }
 0x221   :  { %v825_v6 = vpop.f32.mrf.mxu1 }
 0x222   :  { %v629_v44 = vpop.f32.mrf.mxu0  ;;  %v724_v7 = vmax.f32 %v721_v1, 0.0 }
 0x223   :  { %v630_v42 = vadd.f32 %v783_v23, %v629_v44 }
 0x224   :  { %v814_v49 = vpop.f32.mrf.mxu0  ;;  %726 = vst.msk [vmem:[#allocation7 + $0x8] sm:$0xff] %vm379_vm7, %v724_v7 }
 0x225   :  { %v633_v46 = vmax.f32 %v630_v42, 0.0 }
 0x227   :  { %634 = vst.msk [vmem:[#allocation7] sm:$0xff] %vm379_vm7, %v633_v46 }
 0x228   :  { %873 = shalt.err (!%p870_p0)
}
 0x229   :  { %s898_s4 = smov 128   ;;  %s899_s29 = smov 8  }
 0x22a   :  { %s1431_s11 = sld [smem:[#allocation11_spill]] }
 0x230   :  { %738 = dma.vmem_to_hbm [thread:$0]  %s733_s27, 256, %s1431_s11, [#allocation3], %s898_s4, %s898_s4, %s899_s29  }
 0x231   :  { %886 = dma.done.wait [#allocation3], 256  }
 0x232   :  { %887 = vsyncadd [#allocation3], 4294967040 }
 0x233   :  { %742 = vsyncpa [#allocation3], 1 }
 0x234   :  { %743 = vsyncpa [#allocation4], 1 }
 0x235   :  { %744 = vsyncpa [#allocation6], 1 }

</bundles_post_ra>
